<compile_context>
chip_gen: v7x
topology: tpu7x:2x2x1
jax: 0.10.0
libtpu: 0.0.40
codegen_flags: <defaults>
</compile_context>

<pallas_src>
import jax
import jax.numpy as jnp
from jax import lax
from jax.experimental import pallas as pl
from jax.experimental.pallas import tpu as pltpu


def _round_up(x, m):
    return ((x + m - 1) // m) * m


def _vmem_capacity_bytes():
    """Physical VMEM of the running chip (fallback: v7x-conservative 64 MiB)."""
    try:
        cap = int(pltpu.get_tpu_info().vmem_capacity_bytes)
        if cap > 0:
            return cap
    except Exception:
        pass
    return 64 * 1024 * 1024


_VPU_MAX_CH = 32  # channel threshold at/below which the VPU (lane = modes) path is used


# ----------------------------------------------------------------------------
# Small-channel path: VPU formulation, mode axis on the 128-lane dimension.
#   a_ref: (2, Cin, B, Mblk)    [re, im] of x_ft modes
#   w_ref: (2, Cin, Cout, Mblk)
#   o_ref: (2, B, Cout, Mblk)
# ----------------------------------------------------------------------------
def _make_vpu_kernel(cin):
    def kernel(a_ref, w_ref, o_ref):
        B = a_ref.shape[2]
        cout = w_ref.shape[2]
        mblk = o_ref.shape[3]

        z = jnp.zeros((B, cout, mblk), jnp.float32)
        rr, ii, ri, ir = z, z, z, z
        # Fully-unrolled channel accumulation (cin <= 32 on this path),
        # weight-stationary over B; avoids (B, Cin, Cout, Mblk) temporaries.
        for i in range(cin):
            a_r = a_ref[0, i][:, None, :]   # (B, 1, Mblk)
            a_i = a_ref[1, i][:, None, :]
            w_r = w_ref[0, i][None, :, :]   # (1, Cout, Mblk)
            w_i = w_ref[1, i][None, :, :]
            rr = rr + a_r * w_r
            ii = ii + a_i * w_i
            ri = ri + a_r * w_i
            ir = ir + a_i * w_r

        o_ref[0] = rr - ii     # real part
        o_ref[1] = ri + ir     # imag part

    return kernel


def _choose_vpu_mode_block(modes, batch, cin, cout, vmem_cap):
    """Mode-block size from a real VMEM budget (a/w/out double-buffered + 4 accumulators)."""
    budget = max(vmem_cap // 3, 4 * 1024 * 1024)
    per_mode = 4 * (2 * 2 * (batch * cin + cin * cout + batch * cout)  # a/w/out, x2 buffers
                    + 4 * batch * cout)                                # accumulators
    cap_modes = max(128, ((budget // per_mode) // 128) * 128)
    if modes <= cap_modes:
        return modes, modes            # single full-extent block, no mode padding at all
    return cap_modes, _round_up(modes, cap_modes)


def _spectral_modes_vpu(a_re, a_im, pw):
    """a: (B, Cin, M) re/im -> (B, Cout, M) re/im, using pre-packed VPU weights."""
    B, cin, modes = a_re.shape
    cout, mblk, m_pad = pw["cout"], pw["mblk"], pw["m_pad"]
    w = pw["w"]                                              # (2, Cin, Cout, m_pad)

    a = jnp.stack([a_re, a_im]).astype(jnp.float32)          # (2, B, Cin, M)
    a = jnp.transpose(a, (0, 2, 1, 3))                       # (2, Cin, B, M)
    if m_pad != modes:
        a = jnp.pad(a, ((0, 0), (0, 0), (0, 0), (0, m_pad - modes)))

    vmem_limit = min(int(pw["vmem_cap"] * 3 // 4), 100 * 1024 * 1024)

    out = pl.pallas_call(
        _make_vpu_kernel(cin),
        out_shape=jax.ShapeDtypeStruct((2, B, cout, m_pad), jnp.float32),
        grid_spec=pltpu.PrefetchScalarGridSpec(
            num_scalar_prefetch=0,
            grid=(m_pad // mblk,),
            in_specs=[
                pl.BlockSpec((2, cin, B, mblk), lambda m: (0, 0, 0, m)),
                pl.BlockSpec((2, cin, cout, mblk), lambda m: (0, 0, 0, m)),
            ],
            out_specs=pl.BlockSpec((2, B, cout, mblk), lambda m: (0, 0, 0, m)),
        ),
        compiler_params=pltpu.CompilerParams(
            dimension_semantics=("parallel",),        # each mode block written once
            vmem_limit_bytes=vmem_limit,
        ),
    )(a, w)

    return out[0, :, :, :modes], out[1, :, :, :modes]


# ----------------------------------------------------------------------------
# Large-channel path: MXU formulation, mode-batched dot_general.
#   a_ref: (2, Mblk, Bp, Cin_p), w_ref: (2, Mblk, Cin_p, Cout), o_ref: (2, Mblk, Bp, Cout)
# Lane dims (Cin_p for a, Cout for w/out) are the true channel extents (full-extent
# blocks) -- no 128-padding is DMA'd from HBM.  Cin_p is only rounded to 8 (sublane).
# ----------------------------------------------------------------------------
def _spectral_mxu_kernel(a_ref, w_ref, o_ref):
    ar, ai = a_ref[0], a_ref[1]          # (Mblk, Bp, Cin_p)
    wr, wi = w_ref[0], w_ref[1]          # (Mblk, Cin_p, Cout)

    dn = (((2,), (1,)), ((0,), (0,)))    # contract Cin, batch over modes
    rr = lax.dot_general(ar, wr, dn, preferred_element_type=jnp.float32)
    ii = lax.dot_general(ai, wi, dn, preferred_element_type=jnp.float32)
    ri = lax.dot_general(ar, wi, dn, preferred_element_type=jnp.float32)
    ir = lax.dot_general(ai, wr, dn, preferred_element_type=jnp.float32)

    o_ref[0] = rr - ii
    o_ref[1] = ri + ir


def _choose_mxu_mode_block(modes, b_p, cin_p, cout, vmem_cap):
    budget = max(vmem_cap // 3, 4 * 1024 * 1024)
    per_mode = 4 * 2 * 2 * (b_p * cin_p + cin_p * cout + b_p * cout)  # f32, re+im, x2 buffers
    mblk = max(1, budget // per_mode)
    if mblk >= 8:
        mblk = (mblk // 8) * 8
    mblk = min(mblk, _round_up(modes, 8))      # clamp to the real mode count
    # Prefer >= 2 grid steps so the "parallel" mode axis can shard across v7x's 2 TCs.
    if modes >= 16 and mblk >= _round_up(modes, 8):
        mblk = _round_up((modes + 1) // 2, 8)
    return int(mblk)


def _spectral_modes_mxu(a_re, a_im, pw):
    """a: (B, Cin, M) re/im -> (B, Cout, M) re/im, using pre-packed MXU weights."""
    B, cin, modes = a_re.shape
    cout, cin_p, mblk, m_pad = pw["cout"], pw["cin_p"], pw["mblk"], pw["m_pad"]
    w = pw["w"]                                              # (2, m_pad, cin_p, cout)
    b_p = _round_up(B, 8)

    a = jnp.stack([a_re, a_im]).astype(jnp.float32)          # (2, B, Cin, M)
    a = jnp.transpose(a, (0, 3, 1, 2))                       # (2, M, B, Cin)
    a = jnp.pad(a, ((0, 0), (0, m_pad - modes), (0, b_p - B), (0, cin_p - cin)))

    vmem_limit = min(int(pw["vmem_cap"] * 3 // 4), 100 * 1024 * 1024)

    out = pl.pallas_call(
        _spectral_mxu_kernel,
        out_shape=jax.ShapeDtypeStruct((2, m_pad, b_p, cout), jnp.float32),
        grid_spec=pltpu.PrefetchScalarGridSpec(
            num_scalar_prefetch=0,
            grid=(m_pad // mblk,),
            in_specs=[
                pl.BlockSpec((2, mblk, b_p, cin_p), lambda m: (0, m, 0, 0)),
                pl.BlockSpec((2, mblk, cin_p, cout), lambda m: (0, m, 0, 0)),
            ],
            out_specs=pl.BlockSpec((2, mblk, b_p, cout), lambda m: (0, m, 0, 0)),
        ),
        compiler_params=pltpu.CompilerParams(
            dimension_semantics=("parallel",),
            vmem_limit_bytes=vmem_limit,
        ),
    )(a, w)

    out = out[:, :modes, :B, :cout]                          # (2, M, B, Cout)
    out = jnp.transpose(out, (0, 2, 3, 1))                   # (2, B, Cout, M)
    return out[0], out[1]


# ----------------------------------------------------------------------------
# Init-time weight packing (hoisted out of the per-call path) + forward.
# ----------------------------------------------------------------------------
def pack_spectral_weights(w_re, w_im, batch_hint=8):
    """One-time repack of the complex spectral weights into the kernel layout.

    w_re, w_im: (Cin, Cout, modes1) float32.  Call once at parameter init; the
    forward never re-reads/re-writes the full weight tensor through HBM again.
    """
    cin, cout, modes = w_re.shape
    vmem_cap = _vmem_capacity_bytes()
    b_hint = max(int(batch_hint), 1)
    w = jnp.stack([w_re, w_im]).astype(jnp.float32)          # (2, Cin, Cout, M)

    if cin <= _VPU_MAX_CH and cout <= _VPU_MAX_CH:
        mblk, m_pad = _choose_vpu_mode_block(modes, b_hint, cin, cout, vmem_cap)
        if m_pad != modes:
            w = jnp.pad(w, ((0, 0), (0, 0), (0, 0), (0, m_pad - modes)))
        return dict(path="vpu", w=w, cin=cin, cout=cout, modes=modes,
                    mblk=mblk, m_pad=m_pad, vmem_cap=vmem_cap)

    cin_p = _round_up(cin, 8)                  # sublane pad only; lanes stay unpadded
    b_p = _round_up(b_hint, 8)
    mblk = _choose_mxu_mode_block(modes, b_p, cin_p, cout, vmem_cap)
    m_pad = _round_up(modes, mblk)
    w = jnp.transpose(w, (0, 3, 1, 2))                       # (2, M, Cin, Cout)
    w = jnp.pad(w, ((0, 0), (0, m_pad - modes), (0, cin_p - cin), (0, 0)))
    return dict(path="mxu", w=w, cin=cin, cout=cout, modes=modes,
                cin_p=cin_p, mblk=mblk, m_pad=m_pad, vmem_cap=vmem_cap)


def spectral_conv1d(x, packed_w):
    """Forward pass of SpectralConv1d with pre-packed weights.

    x: (B, Cin, N) float32;  packed_w: output of pack_spectral_weights.
    Returns: (B, Cout, N) float32.
    """
    B, cin, N = x.shape
    assert cin == packed_w["cin"]
    modes = packed_w["modes"]
    n_freq = N // 2 + 1

    # TODO(synk): rfft / irfft have no Pallas equivalent; only the spectral mode
    # mixing (einsum 'bix,iox->box' over the kept modes) runs inside the kernel.
    x_ft = jnp.fft.rfft(x, axis=2)                           # (B, Cin, n_freq) complex64
    a = x_ft[:, :, :modes]
    a_re = jnp.real(a).astype(jnp.float32)
    a_im = jnp.imag(a).astype(jnp.float32)

    if packed_w["path"] == "vpu":
        o_re, o_im = _spectral_modes_vpu(a_re, a_im, packed_w)
    else:
        o_re, o_im = _spectral_modes_mxu(a_re, a_im, packed_w)

    out_modes = lax.complex(o_re, o_im)                      # (B, Cout, modes)
    out_ft = jnp.pad(out_modes, ((0, 0), (0, 0), (0, n_freq - modes)))
    return jnp.fft.irfft(out_ft, n=N, axis=2)                # (B, Cout, N)


def _reference(x, w_re, w_im, modes1):
    """Pure-JAX reference of the full forward pass."""
    B, cin, N = x.shape
    cout = w_re.shape[1]
    x_ft = jnp.fft.rfft(x, axis=2)
    w_c = (w_re + 1j * w_im).astype(jnp.complex64)
    mixed = jnp.einsum("bix,iox->box", x_ft[:, :, :modes1], w_c)
    out_ft = jnp.zeros((B, cout, N // 2 + 1), dtype=jnp.complex64)
    out_ft = out_ft.at[:, :, :modes1].set(mixed)
    return jnp.fft.irfft(out_ft, n=N, axis=2)


if __name__ == "__main__":
    # Small shapes consistent with the module (exercises the small-channel VPU path).
    B, Cin, Cout, N, modes1 = 2, 4, 4, 16, 5   # modes1 <= N // 2 + 1 = 9

    key = jax.random.PRNGKey(0)
    kx, kwr, kwi = jax.random.split(key, 3)
    x = jax.random.normal(kx, (B, Cin, N), dtype=jnp.float32)

    # weights1 = scale * rand(cfloat): uniform [0,1) for real and imag parts.
    scale = 1.0 / (Cin * Cout)
    w_re = scale * jax.random.uniform(kwr, (Cin, Cout, modes1), dtype=jnp.float32)
    w_im = scale * jax.random.uniform(kwi, (Cin, Cout, modes1), dtype=jnp.float32)

    packed = pack_spectral_weights(w_re, w_im, batch_hint=B)   # init-time, once
    out = jax.block_until_ready(spectral_conv1d(x, packed))
    ref = _reference(x, w_re, w_im, modes1)
    assert out.shape == (B, Cout, N)
    assert jnp.allclose(out, ref, atol=1e-5, rtol=1e-5)

    # Also exercise the large-channel MXU path once at a realistic channel count.
    B2, Cin2, Cout2, N2, modes2 = 2, 64, 64, 32, 12
    k2x, k2r, k2i = jax.random.split(jax.random.PRNGKey(1), 3)
    x2 = jax.random.normal(k2x, (B2, Cin2, N2), dtype=jnp.float32)
    s2 = 1.0 / (Cin2 * Cout2)
    w2_re = s2 * jax.random.uniform(k2r, (Cin2, Cout2, modes2), dtype=jnp.float32)
    w2_im = s2 * jax.random.uniform(k2i, (Cin2, Cout2, modes2), dtype=jnp.float32)

    packed2 = pack_spectral_weights(w2_re, w2_im, batch_hint=B2)
    out2 = jax.block_until_ready(spectral_conv1d(x2, packed2))
    ref2 = _reference(x2, w2_re, w2_im, modes2)
    assert out2.shape == (B2, Cout2, N2)
    assert jnp.allclose(out2, ref2, atol=1e-5, rtol=1e-5)

    print("KERNEL_OK")
</pallas_src>

<mosaic_0001>
module attributes {stable_mosaic.version = 11 : i64} {
  func.func @kernel(%arg0: i32, %arg1: memref<2x4x2x5xf32, #tpu.memory_space<vmem>>, %arg2: memref<2x4x4x5xf32, #tpu.memory_space<vmem>>, %arg3: memref<2x2x4x5xf32, #tpu.memory_space<vmem>>) attributes {dimension_semantics = [#tpu.dimension_semantics<parallel>], iteration_bounds = array<i64: 1>, scalar_prefetch = 0 : i64, scratch_operands = 0 : i64, tpu.core_type = #tpu.core_type<tc>, window_params = [{transform_indices = @transform_0, window_bounds = array<i64: 2, 4, 2, 5>}, {transform_indices = @transform_1, window_bounds = array<i64: 2, 4, 4, 5>}, {transform_indices = @transform_2, window_bounds = array<i64: 2, 2, 4, 5>}]} {
    %cst = arith.constant 0.000000e+00 : f32
    %0 = vector.broadcast %cst : f32 to vector<2x4x5xf32>
    %c0 = arith.constant 0 : index
    %c0_0 = arith.constant 0 : index
    %c0_1 = arith.constant 0 : index
    %c0_2 = arith.constant 0 : index
    %1 = vector.load %arg1[%c0, %c0_0, %c0_1, %c0_2] : memref<2x4x2x5xf32, #tpu.memory_space<vmem>>, vector<1x1x2x5xf32>
    %2 = vector.shape_cast %1 : vector<1x1x2x5xf32> to vector<2x5xf32>
    %3 = vector.shape_cast %2 : vector<2x5xf32> to vector<2x1x5xf32>
    %c1 = arith.constant 1 : index
    %c0_3 = arith.constant 0 : index
    %c0_4 = arith.constant 0 : index
    %c0_5 = arith.constant 0 : index
    %4 = vector.load %arg1[%c1, %c0_3, %c0_4, %c0_5] : memref<2x4x2x5xf32, #tpu.memory_space<vmem>>, vector<1x1x2x5xf32>
    %5 = vector.shape_cast %4 : vector<1x1x2x5xf32> to vector<2x5xf32>
    %6 = vector.shape_cast %5 : vector<2x5xf32> to vector<2x1x5xf32>
    %c0_6 = arith.constant 0 : index
    %c0_7 = arith.constant 0 : index
    %c0_8 = arith.constant 0 : index
    %c0_9 = arith.constant 0 : index
    %7 = vector.load %arg2[%c0_6, %c0_7, %c0_8, %c0_9] : memref<2x4x4x5xf32, #tpu.memory_space<vmem>>, vector<1x1x4x5xf32>
    %8 = vector.shape_cast %7 : vector<1x1x4x5xf32> to vector<4x5xf32>
    %9 = vector.shape_cast %8 : vector<4x5xf32> to vector<1x4x5xf32>
    %c1_10 = arith.constant 1 : index
    %c0_11 = arith.constant 0 : index
    %c0_12 = arith.constant 0 : index
    %c0_13 = arith.constant 0 : index
    %10 = vector.load %arg2[%c1_10, %c0_11, %c0_12, %c0_13] : memref<2x4x4x5xf32, #tpu.memory_space<vmem>>, vector<1x1x4x5xf32>
    %11 = vector.shape_cast %10 : vector<1x1x4x5xf32> to vector<4x5xf32>
    %12 = vector.shape_cast %11 : vector<4x5xf32> to vector<1x4x5xf32>
    %13 = vector.broadcast %3 : vector<2x1x5xf32> to vector<2x4x5xf32>
    %14 = vector.broadcast %9 : vector<1x4x5xf32> to vector<2x4x5xf32>
    %15 = arith.mulf %13, %14 : vector<2x4x5xf32>
    %16 = arith.addf %0, %15 : vector<2x4x5xf32>
    %17 = vector.broadcast %6 : vector<2x1x5xf32> to vector<2x4x5xf32>
    %18 = vector.broadcast %12 : vector<1x4x5xf32> to vector<2x4x5xf32>
    %19 = arith.mulf %17, %18 : vector<2x4x5xf32>
    %20 = arith.addf %0, %19 : vector<2x4x5xf32>
    %21 = vector.broadcast %3 : vector<2x1x5xf32> to vector<2x4x5xf32>
    %22 = vector.broadcast %12 : vector<1x4x5xf32> to vector<2x4x5xf32>
    %23 = arith.mulf %21, %22 : vector<2x4x5xf32>
    %24 = arith.addf %0, %23 : vector<2x4x5xf32>
    %25 = vector.broadcast %6 : vector<2x1x5xf32> to vector<2x4x5xf32>
    %26 = vector.broadcast %9 : vector<1x4x5xf32> to vector<2x4x5xf32>
    %27 = arith.mulf %25, %26 : vector<2x4x5xf32>
    %28 = arith.addf %0, %27 : vector<2x4x5xf32>
    %c0_14 = arith.constant 0 : index
    %c1_15 = arith.constant 1 : index
    %c0_16 = arith.constant 0 : index
    %c0_17 = arith.constant 0 : index
    %29 = vector.load %arg1[%c0_14, %c1_15, %c0_16, %c0_17] : memref<2x4x2x5xf32, #tpu.memory_space<vmem>>, vector<1x1x2x5xf32>
    %30 = vector.shape_cast %29 : vector<1x1x2x5xf32> to vector<2x5xf32>
    %31 = vector.shape_cast %30 : vector<2x5xf32> to vector<2x1x5xf32>
    %c1_18 = arith.constant 1 : index
    %c1_19 = arith.constant 1 : index
    %c0_20 = arith.constant 0 : index
    %c0_21 = arith.constant 0 : index
    %32 = vector.load %arg1[%c1_18, %c1_19, %c0_20, %c0_21] : memref<2x4x2x5xf32, #tpu.memory_space<vmem>>, vector<1x1x2x5xf32>
    %33 = vector.shape_cast %32 : vector<1x1x2x5xf32> to vector<2x5xf32>
    %34 = vector.shape_cast %33 : vector<2x5xf32> to vector<2x1x5xf32>
    %c0_22 = arith.constant 0 : index
    %c1_23 = arith.constant 1 : index
    %c0_24 = arith.constant 0 : index
    %c0_25 = arith.constant 0 : index
    %35 = vector.load %arg2[%c0_22, %c1_23, %c0_24, %c0_25] : memref<2x4x4x5xf32, #tpu.memory_space<vmem>>, vector<1x1x4x5xf32>
    %36 = vector.shape_cast %35 : vector<1x1x4x5xf32> to vector<4x5xf32>
    %37 = vector.shape_cast %36 : vector<4x5xf32> to vector<1x4x5xf32>
    %c1_26 = arith.constant 1 : index
    %c1_27 = arith.constant 1 : index
    %c0_28 = arith.constant 0 : index
    %c0_29 = arith.constant 0 : index
    %38 = vector.load %arg2[%c1_26, %c1_27, %c0_28, %c0_29] : memref<2x4x4x5xf32, #tpu.memory_space<vmem>>, vector<1x1x4x5xf32>
    %39 = vector.shape_cast %38 : vector<1x1x4x5xf32> to vector<4x5xf32>
    %40 = vector.shape_cast %39 : vector<4x5xf32> to vector<1x4x5xf32>
    %41 = vector.broadcast %31 : vector<2x1x5xf32> to vector<2x4x5xf32>
    %42 = vector.broadcast %37 : vector<1x4x5xf32> to vector<2x4x5xf32>
    %43 = arith.mulf %41, %42 : vector<2x4x5xf32>
    %44 = arith.addf %16, %43 : vector<2x4x5xf32>
    %45 = vector.broadcast %34 : vector<2x1x5xf32> to vector<2x4x5xf32>
    %46 = vector.broadcast %40 : vector<1x4x5xf32> to vector<2x4x5xf32>
    %47 = arith.mulf %45, %46 : vector<2x4x5xf32>
    %48 = arith.addf %20, %47 : vector<2x4x5xf32>
    %49 = vector.broadcast %31 : vector<2x1x5xf32> to vector<2x4x5xf32>
    %50 = vector.broadcast %40 : vector<1x4x5xf32> to vector<2x4x5xf32>
    %51 = arith.mulf %49, %50 : vector<2x4x5xf32>
    %52 = arith.addf %24, %51 : vector<2x4x5xf32>
    %53 = vector.broadcast %34 : vector<2x1x5xf32> to vector<2x4x5xf32>
    %54 = vector.broadcast %37 : vector<1x4x5xf32> to vector<2x4x5xf32>
    %55 = arith.mulf %53, %54 : vector<2x4x5xf32>
    %56 = arith.addf %28, %55 : vector<2x4x5xf32>
    %c0_30 = arith.constant 0 : index
    %c2 = arith.constant 2 : index
    %c0_31 = arith.constant 0 : index
    %c0_32 = arith.constant 0 : index
    %57 = vector.load %arg1[%c0_30, %c2, %c0_31, %c0_32] : memref<2x4x2x5xf32, #tpu.memory_space<vmem>>, vector<1x1x2x5xf32>
    %58 = vector.shape_cast %57 : vector<1x1x2x5xf32> to vector<2x5xf32>
    %59 = vector.shape_cast %58 : vector<2x5xf32> to vector<2x1x5xf32>
    %c1_33 = arith.constant 1 : index
    %c2_34 = arith.constant 2 : index
    %c0_35 = arith.constant 0 : index
    %c0_36 = arith.constant 0 : index
    %60 = vector.load %arg1[%c1_33, %c2_34, %c0_35, %c0_36] : memref<2x4x2x5xf32, #tpu.memory_space<vmem>>, vector<1x1x2x5xf32>
    %61 = vector.shape_cast %60 : vector<1x1x2x5xf32> to vector<2x5xf32>
    %62 = vector.shape_cast %61 : vector<2x5xf32> to vector<2x1x5xf32>
    %c0_37 = arith.constant 0 : index
    %c2_38 = arith.constant 2 : index
    %c0_39 = arith.constant 0 : index
    %c0_40 = arith.constant 0 : index
    %63 = vector.load %arg2[%c0_37, %c2_38, %c0_39, %c0_40] : memref<2x4x4x5xf32, #tpu.memory_space<vmem>>, vector<1x1x4x5xf32>
    %64 = vector.shape_cast %63 : vector<1x1x4x5xf32> to vector<4x5xf32>
    %65 = vector.shape_cast %64 : vector<4x5xf32> to vector<1x4x5xf32>
    %c1_41 = arith.constant 1 : index
    %c2_42 = arith.constant 2 : index
    %c0_43 = arith.constant 0 : index
    %c0_44 = arith.constant 0 : index
    %66 = vector.load %arg2[%c1_41, %c2_42, %c0_43, %c0_44] : memref<2x4x4x5xf32, #tpu.memory_space<vmem>>, vector<1x1x4x5xf32>
    %67 = vector.shape_cast %66 : vector<1x1x4x5xf32> to vector<4x5xf32>
    %68 = vector.shape_cast %67 : vector<4x5xf32> to vector<1x4x5xf32>
    %69 = vector.broadcast %59 : vector<2x1x5xf32> to vector<2x4x5xf32>
    %70 = vector.broadcast %65 : vector<1x4x5xf32> to vector<2x4x5xf32>
    %71 = arith.mulf %69, %70 : vector<2x4x5xf32>
    %72 = arith.addf %44, %71 : vector<2x4x5xf32>
    %73 = vector.broadcast %62 : vector<2x1x5xf32> to vector<2x4x5xf32>
    %74 = vector.broadcast %68 : vector<1x4x5xf32> to vector<2x4x5xf32>
    %75 = arith.mulf %73, %74 : vector<2x4x5xf32>
    %76 = arith.addf %48, %75 : vector<2x4x5xf32>
    %77 = vector.broadcast %59 : vector<2x1x5xf32> to vector<2x4x5xf32>
    %78 = vector.broadcast %68 : vector<1x4x5xf32> to vector<2x4x5xf32>
    %79 = arith.mulf %77, %78 : vector<2x4x5xf32>
    %80 = arith.addf %52, %79 : vector<2x4x5xf32>
    %81 = vector.broadcast %62 : vector<2x1x5xf32> to vector<2x4x5xf32>
    %82 = vector.broadcast %65 : vector<1x4x5xf32> to vector<2x4x5xf32>
    %83 = arith.mulf %81, %82 : vector<2x4x5xf32>
    %84 = arith.addf %56, %83 : vector<2x4x5xf32>
    %c0_45 = arith.constant 0 : index
    %c3 = arith.constant 3 : index
    %c0_46 = arith.constant 0 : index
    %c0_47 = arith.constant 0 : index
    %85 = vector.load %arg1[%c0_45, %c3, %c0_46, %c0_47] : memref<2x4x2x5xf32, #tpu.memory_space<vmem>>, vector<1x1x2x5xf32>
    %86 = vector.shape_cast %85 : vector<1x1x2x5xf32> to vector<2x5xf32>
    %87 = vector.shape_cast %86 : vector<2x5xf32> to vector<2x1x5xf32>
    %c1_48 = arith.constant 1 : index
    %c3_49 = arith.constant 3 : index
    %c0_50 = arith.constant 0 : index
    %c0_51 = arith.constant 0 : index
    %88 = vector.load %arg1[%c1_48, %c3_49, %c0_50, %c0_51] : memref<2x4x2x5xf32, #tpu.memory_space<vmem>>, vector<1x1x2x5xf32>
    %89 = vector.shape_cast %88 : vector<1x1x2x5xf32> to vector<2x5xf32>
    %90 = vector.shape_cast %89 : vector<2x5xf32> to vector<2x1x5xf32>
    %c0_52 = arith.constant 0 : index
    %c3_53 = arith.constant 3 : index
    %c0_54 = arith.constant 0 : index
    %c0_55 = arith.constant 0 : index
    %91 = vector.load %arg2[%c0_52, %c3_53, %c0_54, %c0_55] : memref<2x4x4x5xf32, #tpu.memory_space<vmem>>, vector<1x1x4x5xf32>
    %92 = vector.shape_cast %91 : vector<1x1x4x5xf32> to vector<4x5xf32>
    %93 = vector.shape_cast %92 : vector<4x5xf32> to vector<1x4x5xf32>
    %c1_56 = arith.constant 1 : index
    %c3_57 = arith.constant 3 : index
    %c0_58 = arith.constant 0 : index
    %c0_59 = arith.constant 0 : index
    %94 = vector.load %arg2[%c1_56, %c3_57, %c0_58, %c0_59] : memref<2x4x4x5xf32, #tpu.memory_space<vmem>>, vector<1x1x4x5xf32>
    %95 = vector.shape_cast %94 : vector<1x1x4x5xf32> to vector<4x5xf32>
    %96 = vector.shape_cast %95 : vector<4x5xf32> to vector<1x4x5xf32>
    %97 = vector.broadcast %87 : vector<2x1x5xf32> to vector<2x4x5xf32>
    %98 = vector.broadcast %93 : vector<1x4x5xf32> to vector<2x4x5xf32>
    %99 = arith.mulf %97, %98 : vector<2x4x5xf32>
    %100 = arith.addf %72, %99 : vector<2x4x5xf32>
    %101 = vector.broadcast %90 : vector<2x1x5xf32> to vector<2x4x5xf32>
    %102 = vector.broadcast %96 : vector<1x4x5xf32> to vector<2x4x5xf32>
    %103 = arith.mulf %101, %102 : vector<2x4x5xf32>
    %104 = arith.addf %76, %103 : vector<2x4x5xf32>
    %105 = vector.broadcast %87 : vector<2x1x5xf32> to vector<2x4x5xf32>
    %106 = vector.broadcast %96 : vector<1x4x5xf32> to vector<2x4x5xf32>
    %107 = arith.mulf %105, %106 : vector<2x4x5xf32>
    %108 = arith.addf %80, %107 : vector<2x4x5xf32>
    %109 = vector.broadcast %90 : vector<2x1x5xf32> to vector<2x4x5xf32>
    %110 = vector.broadcast %93 : vector<1x4x5xf32> to vector<2x4x5xf32>
    %111 = arith.mulf %109, %110 : vector<2x4x5xf32>
    %112 = arith.addf %84, %111 : vector<2x4x5xf32>
    %113 = arith.subf %100, %104 : vector<2x4x5xf32>
    %c0_60 = arith.constant 0 : index
    %c0_61 = arith.constant 0 : index
    %c0_62 = arith.constant 0 : index
    %c0_63 = arith.constant 0 : index
    %114 = vector.load %arg3[%c0_60, %c0_61, %c0_62, %c0_63] : memref<2x2x4x5xf32, #tpu.memory_space<vmem>>, vector<1x2x4x5xf32>
    %115 = vector.shape_cast %114 : vector<1x2x4x5xf32> to vector<2x4x5xf32>
    %116 = vector.shape_cast %113 : vector<2x4x5xf32> to vector<1x2x4x5xf32>
    tpu.vector_store %arg3[%c0_60, %c0_61, %c0_62, %c0_63], %116 {strides = array<i32>} : memref<2x2x4x5xf32, #tpu.memory_space<vmem>>, vector<1x2x4x5xf32>,
    %117 = arith.addf %108, %112 : vector<2x4x5xf32>
    %c1_64 = arith.constant 1 : index
    %c0_65 = arith.constant 0 : index
    %c0_66 = arith.constant 0 : index
    %c0_67 = arith.constant 0 : index
    %118 = vector.load %arg3[%c1_64, %c0_65, %c0_66, %c0_67] : memref<2x2x4x5xf32, #tpu.memory_space<vmem>>, vector<1x2x4x5xf32>
    %119 = vector.shape_cast %118 : vector<1x2x4x5xf32> to vector<2x4x5xf32>
    %120 = vector.shape_cast %117 : vector<2x4x5xf32> to vector<1x2x4x5xf32>
    tpu.vector_store %arg3[%c1_64, %c0_65, %c0_66, %c0_67], %120 {strides = array<i32>} : memref<2x2x4x5xf32, #tpu.memory_space<vmem>>, vector<1x2x4x5xf32>,
    return
  }
  func.func @transform_0(%arg0: i32) -> (i32, i32, i32, i32) {
    %c0_i32 = arith.constant 0 : i32
    %c0_i32_0 = arith.constant 0 : i32
    %c0_i32_1 = arith.constant 0 : i32
    %c0_i32_2 = arith.constant 0 : i32
    return %c0_i32, %c0_i32_0, %c0_i32_1, %arg0 : i32, i32, i32, i32
  }
  func.func @transform_1(%arg0: i32) -> (i32, i32, i32, i32) {
    %c0_i32 = arith.constant 0 : i32
    %c0_i32_0 = arith.constant 0 : i32
    %c0_i32_1 = arith.constant 0 : i32
    %c0_i32_2 = arith.constant 0 : i32
    return %c0_i32, %c0_i32_0, %c0_i32_1, %arg0 : i32, i32, i32, i32
  }
  func.func @transform_2(%arg0: i32) -> (i32, i32, i32, i32) {
    %c0_i32 = arith.constant 0 : i32
    %c0_i32_0 = arith.constant 0 : i32
    %c0_i32_1 = arith.constant 0 : i32
    %c0_i32_2 = arith.constant 0 : i32
    return %c0_i32, %c0_i32_0, %c0_i32_1, %arg0 : i32, i32, i32, i32
  }
}

</mosaic_0001>

<bundles_post_ra>
// kernel: tpu_custom_call.1
= control target key start
LH: loop header
LB: loop body
LE: loop exit
PB: predicated region body
PF: predicated region fallthrough
CT: control target
= control target key end

     0   :  { %7 = vsyncpa [#allocation3], 0  ;;  %s683_s0 = inlined_call_operand.hbm [shape: f32[2,4,2,5], index: 0, kind: input, shape index: {}]   ;;  %s684_s1 = inlined_call_operand.hbm [shape: f32[2,4,4,5], index: 1, kind: input, shape index: {}]   ;;  %s685_s2 = inlined_call_operand.hbm [shape: f32[2,2,4,5], index: 2, kind: output, shape index: {}]  }
   0x1   :  { %8 = vsyncpa [#allocation6], 0 }
   0x2   :  { %9 = vsyncpa [#allocation4], 0  ;;  %s514_s9 = smov [#allocation2]   ;;  %s442_s13 = scalar_lea.hbm %s683_s0, 256 }
   0x3   :  { %s15_s10 = sshll.u32 %s514_s9, 4  ;;  %p443_p0 = scmp.ne.s32.totalorder %s683_s0, %s442_s13  ;;  %s16_s10 = int_to_ptr.vmem [resolvable:$true] %s15_s10 }
   0x4   :  { %p446_p1 = scmp.lt.u32.totalorder %s442_s13, %s683_s0 }
   0x6   :  { %p448_p2 = pnand %p446_p1, %p443_p0 }
   0x8   :  { %451 = shalt.err (!%p448_p2)
}
   0x9   :  { %s452_s18 = scalar_lea.vmem %s16_s10, 256  ;;  %p457_p4 = scmp.lt.s32.totalorder %s16_s10, %s16_s10 }
   0xa   :  { %p453_p3 = scmp.ne.s32.totalorder %s16_s10, %s452_s18  ;;  %p458_p5 = scmp.lt.s32.totalorder %s452_s18, %s452_s18 }
   0xc   :  { %p459_p6 = por %p458_p5, %p457_p4 }
   0xe   :  { %p460_p7 = pnand %p459_p6, %p453_p3 }
  0x10   :  { %463 = shalt.err (!%p460_p7)
}
  0x11   :  { %s515_s19 = smov 32   ;;  %s516_s20 = smov 2  }
  0x12   :  { %21 = dma.hbm_to_vmem [thread:$0]  %s683_s0, 256, %s16_s10, [#allocation3], %s515_s19, %s515_s19, %s516_s20  }
  0x13   :  { %s517_s23 = smov [#allocation5]   ;;  %s464_s27 = scalar_lea.hbm %s684_s1, 512 }
  0x14   :  { %s27_s24 = sshll.u32 %s517_s23, 4  ;;  %p465_p8 = scmp.ne.s32.totalorder %s684_s1, %s464_s27  ;;  %s28_s24 = int_to_ptr.vmem [resolvable:$true] %s27_s24 }
  0x15   :  { %p468_p9 = scmp.lt.u32.totalorder %s464_s27, %s684_s1 }
  0x17   :  { %p470_p10 = pnand %p468_p9, %p465_p8 }
  0x19   :  { %473 = shalt.err (!%p470_p10)
}
  0x1a   :  { %s474_s4 = scalar_lea.vmem %s28_s24, 512  ;;  %p479_p12 = scmp.lt.s32.totalorder %s28_s24, %s28_s24 }
  0x1b   :  { %p475_p11 = scmp.ne.s32.totalorder %s28_s24, %s474_s4  ;;  %p480_p13 = scmp.lt.s32.totalorder %s474_s4, %s474_s4 }
  0x1d   :  { %p481_p0 = por %p480_p13, %p479_p12 }
  0x1f   :  { %p482_p1 = pnand %p481_p0, %p475_p11 }
  0x21   :  { %485 = shalt.err (!%p482_p1)
}
  0x22   :  { %s518_s0 = smov 64   ;;  %s519_s5 = smov 4  }
  0x23   :  { %33 = dma.hbm_to_vmem [thread:$0]  %s684_s1, 512, %s28_s24, [#allocation6], %s518_s0, %s518_s0, %s519_s5  }
  0x24   :  { %508 = dma.done.wait [#allocation3], 256  }
  0x25   :  { %509 = vsyncadd [#allocation3], 4294967040 }
  0x26   :  { %510 = dma.done.wait [#allocation6], 512  }
  0x27   :  { %511 = vsyncadd [#allocation6], 4294966784  ;;  %v53_v0 = vlaneseq  ;;  %v520_v1 = vmov 1966171168   ;;  %v570_v12 = vld [vmem:[#allocation5] sm:$0xf] }
  0x28   :  { %v51_v2 = vunpack.c.l.s4 %v520_v1  ;;  %v426_v7 = vld.sshfl [vmem:[#allocation2] sm:$0x11 pattern:$0x75316420]  ;;  %v583_v23 = vld [vmem:[#allocation5 + $0x4] sm:$0xf] }
  0x29   :  { %v54_v3 = vshrl.u32 %v53_v0, 7  ;;  %v427_v9 = vld.sshfl [vmem:[#allocation2 + $0x8] sm:$0x11 pattern:$0x75316420]  ;;  %v49_v10 = vcombine.high %v426_v7, %v426_v7  ;;  %vm400_vm0 = vcmask 35840  }
  0x2a   :  { %v52_v4 = vunpack.c.0.s8 %v51_v2  ;;  %v428_v13 = vld.sshfl [vmem:[#allocation2 + $0x2] sm:$0x11 pattern:$0x75316420]  ;;  %v74_v14 = vcombine.high %v427_v9, %v427_v9  ;;  %v588_v28 = vld [vmem:[#allocation5 + $0x14] sm:$0xf] }
  0x2b   :  { %v566_v6 = vsub.s32 0, %v54_v3  ;;  %v572_v15 = vld [vmem:[#allocation5 + $0x10] sm:$0xf]  ;;  %v138_v20 = vcombine.high %v428_v13, %v428_v13  ;;  %v599_v36 = vld [vmem:[#allocation5 + $0x8] sm:$0xf]  ;;  %s521_s1 = smov [#allocation7]  }
  0x2c   :  { %v564_v5 = vsub.s32 %v52_v4, %v54_v3  ;;  %v429_v18 = vld.sshfl [vmem:[#allocation2 + $0xa] sm:$0x11 pattern:$0x75316420]  ;;  %v614_v48 = vld [vmem:[#allocation5 + $0xc] sm:$0xf] }
  0x2d   :  { %v430_v24 = vld.sshfl [vmem:[#allocation2 + $0x4] sm:$0x11 pattern:$0x75316420]  ;;  %v163_v26 = vcombine.high %v429_v18, %v429_v18  ;;  %v605_v40 = vld [vmem:[#allocation5 + $0x18] sm:$0xf] }
  0x2e   :  { %v56_v8 = vrot.slane %v426_v7, %v564_v5  ;;  %v81_v11 = vrot.slane %v427_v9, %v564_v5  ;;  %v145_v17 = vrot.slane %v428_v13, %v564_v5  ;;  %v63_v19 = vrot.slane %v49_v10, %v564_v5  ;;  %v431_v31 = vld.sshfl [vmem:[#allocation2 + $0xc] sm:$0x11 pattern:$0x75316420]  ;;  %s413_s8 = sshll.u32 %s521_s1, 4  ;;  %s414_s8 = int_to_ptr.vmem [resolvable:$true] %s413_s8 }
  0x2f   :  { %v170_v22 = vrot.slane %v429_v18, %v564_v5  ;;  %v88_v25 = vrot.slane %v74_v14, %v564_v5  ;;  %v235_v30 = vrot.slane %v430_v24, %v564_v5  ;;  %v260_v35 = vrot.slane %v431_v31, %v564_v5  ;;  %v432_v37 = vld.sshfl [vmem:[#allocation2 + $0x6] sm:$0x11 pattern:$0x75316420]  ;;  %v619_v52 = vld [vmem:[#allocation5 + $0x1c] sm:$0xf]  ;;  %p491_p3 = scmp.lt.s32.totalorder %s414_s8, %s414_s8 }
  0x30   :  { %v575_v16 = vrot.slane %v56_v8, %v566_v6  ;;  %v580_v21 = vrot.slane %v81_v11, %v566_v6  ;;  %v185_v29 = vrot.slane %v145_v17, %v566_v6  ;;  %v593_v32 = vrot.slane %v63_v19, %v566_v6  ;;  %v433_v43 = vld.sshfl [vmem:[#allocation2 + $0xe] sm:$0x11 pattern:$0x75316420]  ;;  %s486_s9 = scalar_lea.vmem %s414_s8, 256 }
  0x31   :  { %v199_v34 = vrot.slane %v170_v22, %v566_v6  ;;  %v602_v38 = vrot.slane %v88_v25, %v566_v6  ;;  %v275_v41 = vrot.slane %v235_v30, %v566_v6  ;;  %v325_v42 = vrot.slane %v432_v37, %v564_v5  ;;  %p487_p2 = scmp.ne.s32.totalorder %s414_s8, %s486_s9  ;;  %p492_p4 = scmp.lt.s32.totalorder %s486_s9, %s486_s9 }
  0x32   :  { %v102_v27 = vmul.f32 %v575_v16, %v570_v12  ;;  %v116_v33 = vmul.f32 %v580_v21, %v572_v15  ;;  %v192_v39 = vmul.f32 %v185_v29, %v583_v23  ;;  %v103_v44 = vmul.f32 %v593_v32, %v570_v12 }
  0x33   :  { %v206_v45 = vmul.f32 %v199_v34, %v588_v28  ;;  %v289_v46 = vrot.slane %v260_v35, %v566_v6  ;;  %v350_v47 = vrot.slane %v433_v43, %v564_v5  ;;  %v117_v49 = vmul.f32 %v602_v38, %v572_v15  ;;  %p493_p5 = por %p492_p4, %p491_p3 }
  0x34   :  { %v194_v50 = vadd.f32 %v192_v39, %v102_v27  ;;  %v282_v51 = vmul.f32 %v275_v41, %v599_v36  ;;  %v365_v53 = vrot.slane %v325_v42, %v566_v6  ;;  %v152_v54 = vrot.slane %v138_v20, %v564_v5 }
  0x35   :  { %v208_v55 = vadd.f32 %v206_v45, %v116_v33  ;;  %v296_v56 = vmul.f32 %v289_v46, %v605_v40  ;;  %v379_v57 = vrot.slane %v350_v47, %v566_v6  ;;  %v177_v58 = vrot.slane %v163_v26, %v564_v5  ;;  %p494_p6 = pnand %p493_p5, %p487_p2 }
  0x36   :  { %v284_v59 = vadd.f32 %v282_v51, %v194_v50  ;;  %v372_v60 = vmul.f32 %v365_v53, %v614_v48  ;;  %v189_v61 = vrot.slane %v152_v54, %v566_v6  ;;  %v228_v62 = vcombine.high %v430_v24, %v430_v24 }
  0x37   :  { %v298_v63 = vadd.f32 %v296_v56, %v208_v55  ;;  %v386_v0 = vmul.f32 %v379_v57, %v619_v52  ;;  %v203_v1 = vrot.slane %v177_v58, %v566_v6  ;;  %v253_v2 = vcombine.high %v431_v31, %v431_v31 }
  0x38   :  { %v374_v3 = vadd.f32 %v372_v60, %v284_v59  ;;  %v193_v4 = vmul.f32 %v189_v61, %v583_v23  ;;  %v242_v7 = vrot.slane %v228_v62, %v564_v5  ;;  %v318_v8 = vcombine.high %v432_v37, %v432_v37 }
  0x39   :  { %v388_v9 = vadd.f32 %v386_v0, %v298_v63  ;;  %v207_v10 = vmul.f32 %v203_v1, %v588_v28  ;;  %v267_v11 = vrot.slane %v253_v2, %v564_v5  ;;  %v343_v13 = vcombine.high %v433_v43, %v433_v43 }
  0x3a   :  { %v195_v14 = vadd.f32 %v193_v4, %v103_v44  ;;  %v279_v17 = vrot.slane %v242_v7, %v566_v6  ;;  %v332_v18 = vrot.slane %v318_v8, %v564_v5  ;;  %v120_v19 = vmul.f32 %v575_v16, %v572_v15 }
  0x3b   :  { %v398_v20 = vsub.f32 %v374_v3, %v388_v9  ;;  %v209_v22 = vadd.f32 %v207_v10, %v117_v49  ;;  %v293_v24 = vrot.slane %v267_v11, %v566_v6  ;;  %v357_v25 = vrot.slane %v343_v13, %v564_v5 }
  0x3c   :  { %v283_v26 = vmul.f32 %v279_v17, %v599_v36  ;;  %v369_v27 = vrot.slane %v332_v18, %v566_v6  ;;  %v124_v30 = vmul.f32 %v580_v21, %v570_v12  ;;  %v210_v31 = vmul.f32 %v185_v29, %v588_v28 }
  0x3d   :  { %401 = vst.msk [vmem:[#allocation7] sm:$0xf] %vm400_vm0, %v398_v20  ;;  %v297_v33 = vmul.f32 %v293_v24, %v605_v40  ;;  %v383_v16 = vrot.slane %v357_v25, %v566_v6  ;;  %v214_v35 = vmul.f32 %v199_v34, %v583_v23  ;;  %v300_v37 = vmul.f32 %v275_v41, %v605_v40 }
  0x3e   :  { %v285_v5 = vadd.f32 %v283_v26, %v195_v14  ;;  %v373_v39 = vmul.f32 %v369_v27, %v614_v48  ;;  %v212_v42 = vadd.f32 %v210_v31, %v120_v19  ;;  %v304_v43 = vmul.f32 %v289_v46, %v599_v36 }
  0x3f   :  { %v299_v44 = vadd.f32 %v297_v33, %v209_v22  ;;  %v387_v21 = vmul.f32 %v383_v16, %v619_v52  ;;  %v216_v29 = vadd.f32 %v214_v35, %v124_v30  ;;  %v390_v45 = vmul.f32 %v365_v53, %v619_v52 }
  0x40   :  { %v375_v47 = vadd.f32 %v373_v39, %v285_v5  ;;  %v302_v49 = vadd.f32 %v300_v37, %v212_v42  ;;  %v394_v6 = vmul.f32 %v379_v57, %v614_v48  ;;  %v121_v34 = vmul.f32 %v593_v32, %v572_v15 }
  0x41   :  { %v389_v41 = vadd.f32 %v387_v21, %v299_v44  ;;  %v306_v50 = vadd.f32 %v304_v43, %v216_v29  ;;  %v125_v51 = vmul.f32 %v602_v38, %v570_v12  ;;  %v211_v46 = vmul.f32 %v189_v61, %v588_v28 }
  0x42   :  { %v392_v54 = vadd.f32 %v390_v45, %v302_v49  ;;  %v215_v55 = vmul.f32 %v203_v1, %v583_v23  ;;  %v301_v56 = vmul.f32 %v279_v17, %v605_v40  ;;  %v305_v53 = vmul.f32 %v293_v24, %v599_v36 }
  0x43   :  { %v399_v58 = vsub.f32 %v375_v47, %v389_v41  ;;  %v396_v59 = vadd.f32 %v394_v6, %v306_v50  ;;  %v213_v57 = vadd.f32 %v211_v46, %v121_v34  ;;  %v391_v60 = vmul.f32 %v369_v27, %v619_v52 }
  0x44   :  { %v217_v15 = vadd.f32 %v215_v55, %v125_v51  ;;  %v395_v32 = vmul.f32 %v383_v16, %v614_v48 }
  0x45   :  { %402 = vst.msk [vmem:[#allocation7 + $0x4] sm:$0xf] %vm400_vm0, %v399_v58  ;;  %v403_v12 = vadd.f32 %v396_v59, %v392_v54  ;;  %v303_v38 = vadd.f32 %v301_v56, %v213_v57 }
  0x46   :  { %v307_v28 = vadd.f32 %v305_v53, %v217_v15 }
  0x47   :  { %406 = vst.msk [vmem:[#allocation7 + $0x8] sm:$0xf] %vm400_vm0, %v403_v12  ;;  %v393_v23 = vadd.f32 %v391_v60, %v303_v38 }
  0x48   :  { %v397_v40 = vadd.f32 %v395_v32, %v307_v28 }
  0x4a   :  { %v404_v36 = vadd.f32 %v397_v40, %v393_v23 }
  0x4c   :  { %407 = vst.msk [vmem:[#allocation7 + $0xc] sm:$0xf] %vm400_vm0, %v404_v36 }
  0x4d   :  { %497 = shalt.err (!%p494_p6)
}
  0x4e   :  { %s498_s12 = scalar_lea.hbm %s685_s2, 256 }
  0x4f   :  { %p499_p7 = scmp.ne.s32.totalorder %s685_s2, %s498_s12  ;;  %p502_p8 = scmp.lt.u32.totalorder %s498_s12, %s685_s2 }
  0x51   :  { %p504_p9 = pnand %p502_p8, %p499_p7 }
  0x53   :  { %507 = shalt.err (!%p504_p9)
}
  0x54   :  { %419 = dma.vmem_to_hbm [thread:$0]  %s414_s8, 256, %s685_s2, [#allocation4], %s518_s0, %s518_s0, %s519_s5  }
  0x55   :  { %512 = dma.done.wait [#allocation4], 256  }
  0x56   :  { %513 = vsyncadd [#allocation4], 4294967040 }
  0x57   :  { %423 = vsyncpa [#allocation3], 1 }
  0x58   :  { %424 = vsyncpa [#allocation6], 1 }
  0x59   :  { %425 = vsyncpa [#allocation4], 1 }

</bundles_post_ra>
